<compile_context>
chip_gen: v7x
topology: tpu7x:2x2x1
jax: 0.10.0
libtpu: 0.0.40
codegen_flags: <defaults>
</compile_context>

<pallas_src>
import functools

import jax
import jax.numpy as jnp
from jax.experimental import pallas as pl
from jax.experimental.pallas import tpu as pltpu


def _temporal_block_kernel(x_cur_ref, x_prev_ref, w1_ref, b1_ref, w2_ref, b2_ref,
                           out_ref, xw_ref, *, K, d, TL, pad):
    # x_cur_ref : (1, TL, Cp)      current time tile (channels lane-dense)
    # x_prev_ref: (1, TL, Cp)      previous time tile (index clamped at t=0)
    # w*_ref    : (K, Cp, Cp)      conv taps as (Cin, Cout) matmul weights
    # b*_ref    : (1, Cp)          f32 biases
    # out_ref   : (1, TL, Cp)
    # xw_ref    : (TL + 2*pad, Cp) persistent VMEM window scratch
    t = pl.program_id(1)
    cdtype = xw_ref.dtype

    # ---- assemble x window covering global rows [t*TL - 2*pad, t*TL + TL) ----
    if pad > 0:
        halo = x_prev_ref[0, TL - 2 * pad:, :]                     # prev-tile tail
        halo = jnp.where(t > 0, halo, jnp.zeros_like(halo))        # causal zeros at t==0
        xw_ref[0:2 * pad, :] = halo
    xw_ref[2 * pad:, :] = x_cur_ref[0]

    # ---- conv1 (causal, dilated) on extended rows [-pad, TL) ----------------
    # accumulator seeded by the first tap; bias added once, fused with ReLU.
    acc1 = jnp.dot(xw_ref[0:TL + pad, :], w1_ref[0],
                   preferred_element_type=jnp.float32)
    for j in range(1, K):
        acc1 = acc1 + jnp.dot(xw_ref[j * d:j * d + TL + pad, :], w1_ref[j],
                              preferred_element_type=jnp.float32)
    h1 = jnp.maximum(acc1 + b1_ref[...], 0.0)                      # (TL+pad, Cp) f32
    if pad > 0:
        # rows with global time < 0 (only possible at t == 0) are causal zeros
        row = jax.lax.broadcasted_iota(jnp.int32, (TL + pad, 1), 0)
        h1 = jnp.where(jnp.logical_or(row >= pad, t > 0), h1, 0.0)
    # TODO(synk): Dropout2d is identity in eval mode; training-mode channel dropout not implemented.
    h1c = h1.astype(cdtype)

    # ---- conv2 (causal, dilated) -> (TL, Cp) --------------------------------
    acc2 = jnp.dot(h1c[0:TL, :], w2_ref[0], preferred_element_type=jnp.float32)
    for j in range(1, K):
        acc2 = acc2 + jnp.dot(h1c[j * d:j * d + TL, :], w2_ref[j],
                              preferred_element_type=jnp.float32)
    h2 = jnp.maximum(acc2 + b2_ref[...], 0.0)

    # ---- residual (downsample is None since n_inputs == n_outputs) + ReLU ---
    res = x_cur_ref[0].astype(jnp.float32)
    out_ref[0] = jnp.maximum(h2 + res, 0.0).astype(out_ref.dtype)


def temporal_block_pallas(x_ncw, W1, b1, W2, b2, *, kernel_size, dilation,
                          compute_dtype=jnp.float32, time_tile=512):
    """TemporalBlock forward. x_ncw: (B, C, L) f32 (PyTorch NCW layout).

    W*: (Cout, Cin, K) already weight-normed, b*: (Cout,). Assumes stride == 1
    and n_inputs == n_outputs (so the residual path is the identity).
    """
    B, C, L = x_ncw.shape
    K = kernel_size
    pad = (K - 1) * dilation

    # lane-dense channel padding (multiple of 128) + sublane-aligned time tile
    Cp = ((C + 127) // 128) * 128
    TL = max(2 * pad, min(time_tile, L))     # halo (2*pad) must fit in one tile
    TL = ((TL + 15) // 16) * 16              # sublane-aligned for f32 and bf16
    Lp = -(-L // TL) * TL                    # pad L up to a tile multiple
    NT = Lp // TL

    # Single re-layout pass NCW -> (B, Lp, Cp) channels-last.  No causal-time
    # padding round trip through HBM: causality is handled in-kernel.
    x_blc = jnp.transpose(x_ncw, (0, 2, 1))
    x_blc = jnp.pad(x_blc, ((0, 0), (0, Lp - L), (0, Cp - C))).astype(compute_dtype)

    def prep_w(W):                                        # (Cout, Cin, K) -> (K, Cp, Cp)
        w = jnp.transpose(W, (2, 1, 0))
        w = jnp.pad(w, ((0, 0), (0, Cp - w.shape[1]), (0, Cp - w.shape[2])))
        return w.astype(compute_dtype)

    def prep_b(b):
        return jnp.pad(b, (0, Cp - b.shape[0])).reshape(1, Cp).astype(jnp.float32)

    w1, w2 = prep_w(W1), prep_w(W2)
    b1p, b2p = prep_b(b1), prep_b(b2)

    # size the scoped-VMEM limit to the real (double-buffered) working set
    itm = jnp.dtype(compute_dtype).itemsize
    vmem_bytes = (2 * 2 * TL * Cp * itm                       # x_cur + x_prev blocks
                  + 2 * TL * Cp * 4                           # output block (f32)
                  + 2 * 2 * (K * Cp * Cp * itm + Cp * 4)      # weights + biases
                  + (TL + 2 * pad) * Cp * itm)                # window scratch
    vmem_limit = int(min(64 * 1024 * 1024, max(2 * vmem_bytes, 4 * 1024 * 1024)))

    kern = functools.partial(_temporal_block_kernel, K=K, d=dilation, TL=TL, pad=pad)
    out = pl.pallas_call(
        kern,
        out_shape=jax.ShapeDtypeStruct((B, Lp, Cp), x_ncw.dtype),
        grid_spec=pltpu.PrefetchScalarGridSpec(
            num_scalar_prefetch=0,
            grid=(B, NT),
            in_specs=[
                pl.BlockSpec((1, TL, Cp), lambda b, t: (b, t, 0)),                        # current tile
                pl.BlockSpec((1, TL, Cp), lambda b, t: (b, jnp.maximum(t - 1, 0), 0)),    # halo source
                pl.BlockSpec((K, Cp, Cp), lambda b, t: (0, 0, 0)),                        # w1 (invariant)
                pl.BlockSpec((1, Cp), lambda b, t: (0, 0)),                               # b1
                pl.BlockSpec((K, Cp, Cp), lambda b, t: (0, 0, 0)),                        # w2 (invariant)
                pl.BlockSpec((1, Cp), lambda b, t: (0, 0)),                               # b2
            ],
            out_specs=pl.BlockSpec((1, TL, Cp), lambda b, t: (b, t, 0)),
            scratch_shapes=[pltpu.VMEM((TL + 2 * pad, Cp), compute_dtype)],
        ),
        compiler_params=pltpu.CompilerParams(
            dimension_semantics=("parallel", "parallel"),
            vmem_limit_bytes=vmem_limit),
    )(x_blc, x_blc, w1, b1p, w2, b2p)

    return jnp.transpose(out[:, :L, :C], (0, 2, 1))


# ---------------- parameter setup + pure-JAX reference (validation glue) ----

def make_weightnorm_conv_params(key, n_out, n_in, k):
    """Deterministic init mimicking weight_norm(Conv1d(...)): W = g * v / ||v||."""
    kv, kb = jax.random.split(key)
    v = jax.random.normal(kv, (n_out, n_in, k), jnp.float32) * 0.01
    g = jnp.linalg.norm(v.reshape(n_out, -1), axis=1)
    w = v * (g / jnp.maximum(jnp.linalg.norm(v.reshape(n_out, -1), axis=1),
                             1e-12))[:, None, None]              # == v here
    fan_in = n_in * k
    b = jax.random.uniform(kb, (n_out,), jnp.float32,
                           -1.0 / jnp.sqrt(fan_in), 1.0 / jnp.sqrt(fan_in))
    return w, b                                                  # w: (Cout, Cin, K)


def ref_temporal_block(x_ncw, W1, b1, W2, b2, dilation, padding):
    """Pure-JAX reference matching the PyTorch NCW conv semantics."""
    def conv(x, w, b):
        y = jax.lax.conv_general_dilated(
            x, w, window_strides=(1,), padding=[(padding, padding)],
            rhs_dilation=(dilation,), dimension_numbers=("NCH", "OIH", "NCH"))
        return y + b[None, :, None]

    h = conv(x_ncw, W1, b1)[:, :, :-padding]          # chomp
    h = jnp.maximum(h, 0.0)
    h = conv(h, W2, b2)[:, :, :-padding]              # chomp
    h = jnp.maximum(h, 0.0)
    return jnp.maximum(h + x_ncw, 0.0)                # downsample is None


if __name__ == "__main__":
    # Small shapes consistent with the module (n_inputs == n_outputs so that
    # conv2's declared in_channels and the identity residual are valid).
    n_inputs = n_outputs = 8
    kernel_size, stride, dilation = 3, 1, 2
    padding = (kernel_size - 1) * dilation            # standard TCN causal padding
    B, L = 2, 16

    key = jax.random.PRNGKey(0)
    k1, k2, kx = jax.random.split(key, 3)
    W1, b1 = make_weightnorm_conv_params(k1, n_outputs, n_inputs, kernel_size)
    W2, b2 = make_weightnorm_conv_params(k2, n_outputs, n_outputs, kernel_size)
    x_ncw = jax.random.normal(kx, (B, n_inputs, L), jnp.float32)   # PyTorch NCW

    out_ncw = temporal_block_pallas(x_ncw, W1, b1, W2, b2,
                                    kernel_size=kernel_size, dilation=dilation)
    jax.block_until_ready(out_ncw)

    ref = ref_temporal_block(x_ncw, W1, b1, W2, b2, dilation, padding)
    assert out_ncw.shape == (B, n_outputs, L)
    assert jnp.allclose(out_ncw, ref, atol=1e-4, rtol=1e-4), "f32 mismatch vs reference"

    # bf16 matmul path (MXU-native on v6e/v7x; elementwise math stays f32).
    out_bf16 = temporal_block_pallas(x_ncw, W1, b1, W2, b2,
                                     kernel_size=kernel_size, dilation=dilation,
                                     compute_dtype=jnp.bfloat16)
    jax.block_until_ready(out_bf16)
    assert jnp.allclose(out_bf16, ref, atol=5e-2, rtol=5e-2), "bf16 mismatch vs reference"

    print("KERNEL_OK")
</pallas_src>

<mosaic_0001>
module attributes {stable_mosaic.version = 11 : i64} {
  func.func @_temporal_block_kernel(%arg0: i32, %arg1: i32, %arg2: memref<1x16x128xf32, #tpu.memory_space<vmem>>, %arg3: memref<1x16x128xf32, #tpu.memory_space<vmem>>, %arg4: memref<3x128x128xf32, #tpu.memory_space<vmem>>, %arg5: memref<1x128xf32, #tpu.memory_space<vmem>>, %arg6: memref<3x128x128xf32, #tpu.memory_space<vmem>>, %arg7: memref<1x128xf32, #tpu.memory_space<vmem>>, %arg8: memref<1x16x128xf32, #tpu.memory_space<vmem>>, %arg9: memref<24x128xf32, #tpu.memory_space<vmem>>) attributes {dimension_semantics = [#tpu.dimension_semantics<parallel>, #tpu.dimension_semantics<parallel>], iteration_bounds = array<i64: 2, 1>, scalar_prefetch = 0 : i64, scratch_operands = 1 : i64, tpu.core_type = #tpu.core_type<tc>, window_params = [{transform_indices = @transform_0, window_bounds = array<i64: 1, 16, 128>}, {transform_indices = @transform_1, window_bounds = array<i64: 1, 16, 128>}, {pipeline_mode = #tpu.pipeline_mode<synchronous>, transform_indices = @transform_2, window_bounds = array<i64: 3, 128, 128>}, {pipeline_mode = #tpu.pipeline_mode<synchronous>, transform_indices = @transform_3, window_bounds = array<i64: 1, 128>}, {pipeline_mode = #tpu.pipeline_mode<synchronous>, transform_indices = @transform_4, window_bounds = array<i64: 3, 128, 128>}, {pipeline_mode = #tpu.pipeline_mode<synchronous>, transform_indices = @transform_5, window_bounds = array<i64: 1, 128>}, {transform_indices = @transform_6, window_bounds = array<i64: 1, 16, 128>}]} {
    %c0 = arith.constant 0 : index
    %c8 = arith.constant 8 : index
    %c0_0 = arith.constant 0 : index
    %0 = vector.load %arg3[%c0, %c8, %c0_0] : memref<1x16x128xf32, #tpu.memory_space<vmem>>, vector<1x8x128xf32>
    %1 = vector.shape_cast %0 : vector<1x8x128xf32> to vector<8x128xf32>
    %c0_i32 = arith.constant 0 : i32
    %2 = arith.cmpi sgt, %arg1, %c0_i32 : i32
    %cst = arith.constant 0.000000e+00 : f32
    %3 = vector.broadcast %cst : f32 to vector<8x128xf32>
    %4 = arith.select %2, %1, %3 : vector<8x128xf32>
    %c0_1 = arith.constant 0 : index
    %c0_2 = arith.constant 0 : index
    %5 = vector.load %arg9[%c0_1, %c0_2] : memref<24x128xf32, #tpu.memory_space<vmem>>, vector<8x128xf32>
    tpu.vector_store %arg9[%c0_1, %c0_2], %4 {strides = array<i32>} : memref<24x128xf32, #tpu.memory_space<vmem>>, vector<8x128xf32>,
    %c0_3 = arith.constant 0 : index
    %c0_4 = arith.constant 0 : index
    %c0_5 = arith.constant 0 : index
    %6 = vector.load %arg2[%c0_3, %c0_4, %c0_5] : memref<1x16x128xf32, #tpu.memory_space<vmem>>, vector<1x16x128xf32>
    %7 = vector.shape_cast %6 : vector<1x16x128xf32> to vector<16x128xf32>
    %c8_6 = arith.constant 8 : index
    %c0_7 = arith.constant 0 : index
    %8 = vector.load %arg9[%c8_6, %c0_7] : memref<24x128xf32, #tpu.memory_space<vmem>>, vector<16x128xf32>
    tpu.vector_store %arg9[%c8_6, %c0_7], %7 {strides = array<i32>} : memref<24x128xf32, #tpu.memory_space<vmem>>, vector<16x128xf32>,
    %c0_8 = arith.constant 0 : index
    %c0_9 = arith.constant 0 : index
    %9 = vector.load %arg9[%c0_8, %c0_9] : memref<24x128xf32, #tpu.memory_space<vmem>>, vector<20x128xf32>
    %c0_10 = arith.constant 0 : index
    %c0_11 = arith.constant 0 : index
    %c0_12 = arith.constant 0 : index
    %10 = vector.load %arg4[%c0_10, %c0_11, %c0_12] : memref<3x128x128xf32, #tpu.memory_space<vmem>>, vector<1x128x128xf32>
    %11 = vector.shape_cast %10 : vector<1x128x128xf32> to vector<128x128xf32>
    %cst_13 = arith.constant dense<0.000000e+00> : vector<20x128xf32>
    %12 = tpu.matmul %9, %11, %cst_13 {dimension_numbers = #tpu.dot_dimension_numbers<[1], [0], [0], [1], [0, 0, 1, 1], [], []>} : vector<20x128xf32>, vector<128x128xf32>, vector<20x128xf32> -> vector<20x128xf32>
    %c2 = arith.constant 2 : index
    %c0_14 = arith.constant 0 : index
    %13 = vector.load %arg9[%c2, %c0_14] : memref<24x128xf32, #tpu.memory_space<vmem>>, vector<20x128xf32>
    %c1 = arith.constant 1 : index
    %c0_15 = arith.constant 0 : index
    %c0_16 = arith.constant 0 : index
    %14 = vector.load %arg4[%c1, %c0_15, %c0_16] : memref<3x128x128xf32, #tpu.memory_space<vmem>>, vector<1x128x128xf32>
    %15 = vector.shape_cast %14 : vector<1x128x128xf32> to vector<128x128xf32>
    %cst_17 = arith.constant dense<0.000000e+00> : vector<20x128xf32>
    %16 = tpu.matmul %13, %15, %cst_17 {dimension_numbers = #tpu.dot_dimension_numbers<[1], [0], [0], [1], [0, 0, 1, 1], [], []>} : vector<20x128xf32>, vector<128x128xf32>, vector<20x128xf32> -> vector<20x128xf32>
    %17 = arith.addf %12, %16 : vector<20x128xf32>
    %c4 = arith.constant 4 : index
    %c0_18 = arith.constant 0 : index
    %18 = vector.load %arg9[%c4, %c0_18] : memref<24x128xf32, #tpu.memory_space<vmem>>, vector<20x128xf32>
    %c2_19 = arith.constant 2 : index
    %c0_20 = arith.constant 0 : index
    %c0_21 = arith.constant 0 : index
    %19 = vector.load %arg4[%c2_19, %c0_20, %c0_21] : memref<3x128x128xf32, #tpu.memory_space<vmem>>, vector<1x128x128xf32>
    %20 = vector.shape_cast %19 : vector<1x128x128xf32> to vector<128x128xf32>
    %cst_22 = arith.constant dense<0.000000e+00> : vector<20x128xf32>
    %21 = tpu.matmul %18, %20, %cst_22 {dimension_numbers = #tpu.dot_dimension_numbers<[1], [0], [0], [1], [0, 0, 1, 1], [], []>} : vector<20x128xf32>, vector<128x128xf32>, vector<20x128xf32> -> vector<20x128xf32>
    %22 = arith.addf %17, %21 : vector<20x128xf32>
    %c0_23 = arith.constant 0 : index
    %c0_24 = arith.constant 0 : index
    %23 = vector.load %arg5[%c0_23, %c0_24] : memref<1x128xf32, #tpu.memory_space<vmem>>, vector<1x128xf32>
    %24 = vector.broadcast %23 : vector<1x128xf32> to vector<20x128xf32>
    %25 = arith.addf %22, %24 : vector<20x128xf32>
    %cst_25 = arith.constant 0.000000e+00 : f32
    %26 = vector.broadcast %cst_25 : f32 to vector<20x128xf32>
    %27 = arith.maximumf %25, %26 : vector<20x128xf32>
    %28 = tpu.iota {dimensions = array<i32: 0>} : vector<20x1xi32>
    %c4_i32 = arith.constant 4 : i32
    %29 = vector.broadcast %c4_i32 : i32 to vector<20x1xi32>
    %30 = arith.cmpi sge, %28, %29 : vector<20x1xi32>
    %c0_i32_26 = arith.constant 0 : i32
    %31 = arith.cmpi sgt, %arg1, %c0_i32_26 : i32
    %32 = vector.broadcast %31 : i1 to vector<20x1xi1>
    %33 = arith.ori %30, %32 : vector<20x1xi1>
    %cst_27 = arith.constant 0.000000e+00 : f32
    %34 = vector.shape_cast %33 : vector<20x1xi1> to vector<20x1xi1>
    %35 = vector.broadcast %34 : vector<20x1xi1> to vector<20x128xi1>
    %36 = vector.broadcast %cst_27 : f32 to vector<20x128xf32>
    %37 = arith.select %35, %27, %36 : vector<20x128xi1>, vector<20x128xf32>
    %38 = vector.extract_strided_slice %37 {offsets = [0, 0], sizes = [16, 128], strides = [1, 1]} : vector<20x128xf32> to vector<16x128xf32>
    %c0_28 = arith.constant 0 : index
    %c0_29 = arith.constant 0 : index
    %c0_30 = arith.constant 0 : index
    %39 = vector.load %arg6[%c0_28, %c0_29, %c0_30] : memref<3x128x128xf32, #tpu.memory_space<vmem>>, vector<1x128x128xf32>
    %40 = vector.shape_cast %39 : vector<1x128x128xf32> to vector<128x128xf32>
    %cst_31 = arith.constant dense<0.000000e+00> : vector<16x128xf32>
    %41 = tpu.matmul %38, %40, %cst_31 {dimension_numbers = #tpu.dot_dimension_numbers<[1], [0], [0], [1], [0, 0, 1, 1], [], []>} : vector<16x128xf32>, vector<128x128xf32>, vector<16x128xf32> -> vector<16x128xf32>
    %42 = vector.extract_strided_slice %37 {offsets = [2, 0], sizes = [16, 128], strides = [1, 1]} : vector<20x128xf32> to vector<16x128xf32>
    %c1_32 = arith.constant 1 : index
    %c0_33 = arith.constant 0 : index
    %c0_34 = arith.constant 0 : index
    %43 = vector.load %arg6[%c1_32, %c0_33, %c0_34] : memref<3x128x128xf32, #tpu.memory_space<vmem>>, vector<1x128x128xf32>
    %44 = vector.shape_cast %43 : vector<1x128x128xf32> to vector<128x128xf32>
    %cst_35 = arith.constant dense<0.000000e+00> : vector<16x128xf32>
    %45 = tpu.matmul %42, %44, %cst_35 {dimension_numbers = #tpu.dot_dimension_numbers<[1], [0], [0], [1], [0, 0, 1, 1], [], []>} : vector<16x128xf32>, vector<128x128xf32>, vector<16x128xf32> -> vector<16x128xf32>
    %46 = arith.addf %41, %45 : vector<16x128xf32>
    %47 = vector.extract_strided_slice %37 {offsets = [4, 0], sizes = [16, 128], strides = [1, 1]} : vector<20x128xf32> to vector<16x128xf32>
    %c2_36 = arith.constant 2 : index
    %c0_37 = arith.constant 0 : index
    %c0_38 = arith.constant 0 : index
    %48 = vector.load %arg6[%c2_36, %c0_37, %c0_38] : memref<3x128x128xf32, #tpu.memory_space<vmem>>, vector<1x128x128xf32>
    %49 = vector.shape_cast %48 : vector<1x128x128xf32> to vector<128x128xf32>
    %cst_39 = arith.constant dense<0.000000e+00> : vector<16x128xf32>
    %50 = tpu.matmul %47, %49, %cst_39 {dimension_numbers = #tpu.dot_dimension_numbers<[1], [0], [0], [1], [0, 0, 1, 1], [], []>} : vector<16x128xf32>, vector<128x128xf32>, vector<16x128xf32> -> vector<16x128xf32>
    %51 = arith.addf %46, %50 : vector<16x128xf32>
    %c0_40 = arith.constant 0 : index
    %c0_41 = arith.constant 0 : index
    %52 = vector.load %arg7[%c0_40, %c0_41] : memref<1x128xf32, #tpu.memory_space<vmem>>, vector<1x128xf32>
    %53 = vector.broadcast %52 : vector<1x128xf32> to vector<16x128xf32>
    %54 = arith.addf %51, %53 : vector<16x128xf32>
    %cst_42 = arith.constant 0.000000e+00 : f32
    %55 = vector.broadcast %cst_42 : f32 to vector<16x128xf32>
    %56 = arith.maximumf %54, %55 : vector<16x128xf32>
    %c0_43 = arith.constant 0 : index
    %c0_44 = arith.constant 0 : index
    %c0_45 = arith.constant 0 : index
    %57 = vector.load %arg2[%c0_43, %c0_44, %c0_45] : memref<1x16x128xf32, #tpu.memory_space<vmem>>, vector<1x16x128xf32>
    %58 = vector.shape_cast %57 : vector<1x16x128xf32> to vector<16x128xf32>
    %59 = arith.addf %56, %58 : vector<16x128xf32>
    %cst_46 = arith.constant 0.000000e+00 : f32
    %60 = vector.broadcast %cst_46 : f32 to vector<16x128xf32>
    %61 = arith.maximumf %59, %60 : vector<16x128xf32>
    %c0_47 = arith.constant 0 : index
    %c0_48 = arith.constant 0 : index
    %c0_49 = arith.constant 0 : index
    %62 = vector.load %arg8[%c0_47, %c0_48, %c0_49] : memref<1x16x128xf32, #tpu.memory_space<vmem>>, vector<1x16x128xf32>
    %63 = vector.shape_cast %62 : vector<1x16x128xf32> to vector<16x128xf32>
    %64 = vector.shape_cast %61 : vector<16x128xf32> to vector<1x16x128xf32>
    tpu.vector_store %arg8[%c0_47, %c0_48, %c0_49], %64 {strides = array<i32>} : memref<1x16x128xf32, #tpu.memory_space<vmem>>, vector<1x16x128xf32>,
    return
  }
  func.func @transform_0(%arg0: i32, %arg1: i32) -> (i32, i32, i32) {
    %c0_i32 = arith.constant 0 : i32
    %c0_i32_0 = arith.constant 0 : i32
    return %arg0, %arg1, %c0_i32 : i32, i32, i32
  }
  func.func @transform_1(%arg0: i32, %arg1: i32) -> (i32, i32, i32) {
    %c1_i32 = arith.constant 1 : i32
    %0 = arith.subi %arg1, %c1_i32 : i32
    %c0_i32 = arith.constant 0 : i32
    %1 = arith.maxsi %0, %c0_i32 : i32
    %c0_i32_0 = arith.constant 0 : i32
    %c0_i32_1 = arith.constant 0 : i32
    return %arg0, %1, %c0_i32_0 : i32, i32, i32
  }
  func.func @transform_2(%arg0: i32, %arg1: i32) -> (i32, i32, i32) {
    %c0_i32 = arith.constant 0 : i32
    %c0_i32_0 = arith.constant 0 : i32
    %c0_i32_1 = arith.constant 0 : i32
    %c0_i32_2 = arith.constant 0 : i32
    return %c0_i32, %c0_i32_0, %c0_i32_1 : i32, i32, i32
  }
  func.func @transform_3(%arg0: i32, %arg1: i32) -> (i32, i32) {
    %c0_i32 = arith.constant 0 : i32
    %c0_i32_0 = arith.constant 0 : i32
    %c0_i32_1 = arith.constant 0 : i32
    return %c0_i32, %c0_i32_0 : i32, i32
  }
  func.func @transform_4(%arg0: i32, %arg1: i32) -> (i32, i32, i32) {
    %c0_i32 = arith.constant 0 : i32
    %c0_i32_0 = arith.constant 0 : i32
    %c0_i32_1 = arith.constant 0 : i32
    %c0_i32_2 = arith.constant 0 : i32
    return %c0_i32, %c0_i32_0, %c0_i32_1 : i32, i32, i32
  }
  func.func @transform_5(%arg0: i32, %arg1: i32) -> (i32, i32) {
    %c0_i32 = arith.constant 0 : i32
    %c0_i32_0 = arith.constant 0 : i32
    %c0_i32_1 = arith.constant 0 : i32
    return %c0_i32, %c0_i32_0 : i32, i32
  }
  func.func @transform_6(%arg0: i32, %arg1: i32) -> (i32, i32, i32) {
    %c0_i32 = arith.constant 0 : i32
    %c0_i32_0 = arith.constant 0 : i32
    return %arg0, %arg1, %c0_i32 : i32, i32, i32
  }
}

</mosaic_0001>

<bundles_post_ra>
// kernel: tpu_custom_call.1
= control target key start
LH: loop header
LB: loop body
LE: loop exit
PB: predicated region body
PF: predicated region fallthrough
CT: control target
= control target key end

     0   :  { %s2459_s0 = inlined_call_operand.hbm [shape: f32[2,16,128], index: 0, kind: input, shape index: {}]   ;;  %s2460_s1 = inlined_call_operand.hbm [shape: f32[2,16,128], index: 1, kind: input, shape index: {}]   ;;  %s2461_s2 = inlined_call_operand.hbm [shape: f32[3,128,128], index: 2, kind: input, shape index: {}]   ;;  %s2462_s3 = inlined_call_operand.vmem [shape: f32[1,128], index: 3, kind: input, shape index: {}]   ;;  %s2463_s4 = inlined_call_operand.hbm [shape: f32[3,128,128], index: 4, kind: input, shape index: {}]   ;;  %s2464_s5 = inlined_call_operand.vmem [shape: f32[1,128], index: 5, kind: input, shape index: {}]   ;;  %s2465_s6 = inlined_call_operand.hbm [shape: f32[2,16,128], index: 6, kind: output, shape index: {}]  }
   0x1   :  { %2476 = sst [smem:[#allocation21_spill]] %s2459_s0 }
   0x2   :  { %2477 = sst [smem:[#allocation22_spill]] %s2461_s2 }
   0x3   :  { %2478 = sst [smem:[#allocation23_spill]] %s2463_s4 }
   0x4   :  { %11 = vsyncpa [#allocation4], 0 }
   0x5   :  { %13 = vsyncpa [#allocation4 + $0x1], 0 }
   0x6   :  { %14 = vsyncpa [#allocation7], 0 }
   0x7   :  { %16 = vsyncpa [#allocation7 + $0x1], 0 }
   0x8   :  { %17 = vsyncpa [#allocation10], 0 }
   0x9   :  { %18 = vsyncpa [#allocation5], 0 }
   0xa   :  { %20 = vsyncpa [#allocation5 + $0x1], 0  ;;  %s2078_s21 = smov 0   ;;  %s2080_s22 = smov 0  }
   0xb   :  { %s2082_s23 = smov 0   ;;  %s2084_s24 = smov 0  }
   0xc   :  { %s2086_s25 = smov 0   ;;  %s2088_s26 = smov 0  }
   0xd LB: > { %2479 = sst [smem:[#allocation17_spill]] %s2017_s23  ;;  %s2109_s27 = sadd.s32 4294967295, %s2029_s26   ;;  %s2029_s26 = sphi %s2088_s26, %s26_s26   ;;  %s2025_s25 = sphi %s2086_s25, %s2506_s25   ;;  %s2021_s24 = sphi %s2084_s24, %s2505_s24   ;;  %s2017_s23 = sphi %s2082_s23, %s2504_s23   ;;  %s2013_s22 = sphi %s2080_s22, %s2508_s22   ;;  %s2009_s21 = sphi %s2078_s21, %s2507_s21  }
   0xe   : > { %2480 = sst [smem:[#allocation18_spill]] %s2025_s25  ;;  %s1185_s28 = sadd.s32 4294967294, %s2029_s26  }
   0xf   : > { %p60_p0 = scmp.ne.s32.totalorder %s2013_s22, %s2009_s21  ;;  %p2466_p1 = scmp.eq.s32.totalorder %s2109_s27, 0 }
  0x10   : > { %p210_p3 = scmp.eq.s32.totalorder %s1185_s28, 1  ;;  %p1186_p5 = scmp.ge.s32.totalorder %s2029_s26, 1 }
  0x11   : > { %p2118_p4 = por %p2466_p1, %p60_p0  ;;  %p217_p7 = scmp.lt.s32.totalorder %s2029_s26, 3 }
  0x12   : > { %p2123_p6 = por %p210_p3, %p60_p0  ;;  %s2031_s8 = smov [#allocation8]  }
  0x13   : > { %s2481_s29 = scalar_select %p2118_p4, 1, 0 }
  0x14   : > { %s2482_s30 = scalar_select %p2123_p6, 1, 0 }
  0x15   : > { %p2128_p8 = pnand %p1186_p5, %p217_p7  ;;  %s229_s9 = sshll.u32 %s2031_s8, 4  ;;  %s2132_s9 = int_to_ptr.vmem [resolvable:$true] %s229_s9 }
  0x16   : > { %s2032_s11 = smov [#allocation9]   ;;  %s2485_s2 = sld [smem:[#allocation22_spill]] }
  0x17   : > { %p1738_p9 = pneg %p2128_p8  ;;  %s245_s12 = sshll.u32 %s2032_s11, 4  ;;  %s2143_s12 = int_to_ptr.vmem [resolvable:$true] %s245_s12 }
  0x19   : > { %p2139_p11 = pnand %p1738_p9, %p2466_p1 }
  0x1b   : > { %p1821_p13 = pneg %p2139_p11 }
  0x1c   : > { %s1819_s15 = scalar_lea.hbm %s2485_s2, 6144 }
  0x1d   : > { %p1820_p12 = scmp.ne.s32.totalorder %s2485_s2, %s1819_s15  ;;  %p1826_p5 = scmp.lt.u32.totalorder %s1819_s15, %s2485_s2 }
  0x1f   : > { %p1822_p0 = pnand %p1821_p13, %p1820_p12 }
  0x21   : > { %p1823_p3 = pneg %p1822_p0 }
  0x23   : > { %p1828_p7 = pnand %p1826_p5, %p1823_p3 }
  0x25   : > { %1831 = shalt.err (!%p1828_p7)
}
  0x26   : > { %s1832_s20 = scalar_lea.vmem %s2132_s9, 6144  ;;  %p1840_p2 = scmp.lt.s32.totalorder %s2132_s9, %s2132_s9 }
  0x27   : > { %p1833_p9 = scmp.ne.s32.totalorder %s2132_s9, %s1832_s20  ;;  %p1841_p12 = scmp.lt.s32.totalorder %s1832_s20, %s1832_s20 }
  0x29   : > { %p1835_p10 = pnand %p1833_p9, %p1821_p13  ;;  %p1842_p0 = por %p1841_p12, %p1840_p2 }
  0x2b   : > { %p1836_p1 = pneg %p1835_p10 }
  0x2d   : > { %p1843_p6 = pnand %p1842_p0, %p1836_p1 }
  0x2f   : > { %1846 = shalt.err (!%p1843_p6)
}
  0x30   : > { %s2467_s28 = smov 128   ;;  %s2469_s8 = smov 8  }
  0x31   : > { %1741 = dma.hbm_to_vmem [thread:$0]  (!%p2139_p11), %s2485_s2, 6144, %s2132_s9, [#allocation7], %s2467_s28, %s2467_s28, %s2469_s8  }
  0x32   : > { %s2486_s4 = sld [smem:[#allocation23_spill]] }
  0x38   : > { %s1847_s16 = scalar_lea.hbm %s2486_s4, 6144 }
  0x39   : > { %p1848_p1 = scmp.ne.s32.totalorder %s2486_s4, %s1847_s16  ;;  %p1854_p10 = scmp.lt.u32.totalorder %s1847_s16, %s2486_s4 }
  0x3b   : > { %p1850_p2 = pnand %p1848_p1, %p1821_p13 }
  0x3d   : > { %p1851_p6 = pneg %p1850_p2 }
  0x3f   : > { %p1856_p3 = pnand %p1854_p10, %p1851_p6 }
  0x41   : > { %1859 = shalt.err (!%p1856_p3)
}
  0x42   : > { %s1860_s9 = scalar_lea.vmem %s2143_s12, 6144  ;;  %p1868_p12 = scmp.lt.s32.totalorder %s2143_s12, %s2143_s12 }
  0x43   : > { %p1861_p5 = scmp.ne.s32.totalorder %s2143_s12, %s1860_s9  ;;  %p1869_p0 = scmp.lt.s32.totalorder %s1860_s9, %s1860_s9 }
  0x45   : > { %p1863_p7 = pnand %p1861_p5, %p1821_p13  ;;  %p1870_p1 = por %p1869_p0, %p1868_p12 }
  0x47   : > { %p1864_p9 = pneg %p1863_p7 }
  0x49   : > { %p1871_p2 = pnand %p1870_p1, %p1864_p9 }
  0x4b   : > { %1874 = shalt.err (!%p1871_p2)
}
  0x4c   : > { %1744 = dma.hbm_to_vmem [thread:$0]  (!%p2139_p11), %s2486_s4, 6144, %s2143_s12, [#allocation10], %s2467_s28, %s2467_s28, %s2469_s8  }
  0x4d   : > { %s38_s10 = sadd.s32 1, %s2025_s25  ;;  %s47_s14 = sadd.s32 1, %s2017_s23 }
  0x4e   : > { %p40_p13 = scmp.ge.s32.totalorder %s38_s10, 2  ;;  %p54_p6 = scmp.ne.s32.totalorder %s2017_s23, %s2013_s22 }
  0x4f   : > { %p55_p10 = scmp.eq.s32.totalorder %s2029_s26, 0  ;;  %p1758_p3 = scmp.lt.s32.totalorder %s2029_s26, 2 }
  0x50   : > { %s2510_s10 = smov (%p40_p13, %s38_s10), 0  ;;  %p2488_p7 = scmp.eq.s32.totalorder %s2109_s27, 1 }
  0x51   : > { %2487 = sst [smem:[#allocation19_spill]] %s2510_s10  ;;  %p56_p5 = por %p55_p10, %p54_p6 }
  0x52   : > { %p2213_p9 = por %p2488_p7, %p54_p6  ;;  %s42_s16 = ssub.s32 %s2025_s25, %s2510_s10 }
  0x53   : > { %s262_s17 = sand.u32 1, %s2017_s23   ;;  %p45_p12 = scmp.eq.s32.totalorder %s42_s16, 0 }
  0x54   : > { %s2489_s15 = scalar_select %p2213_p9, 1, 0 }
  0x55   : > { %s2220_s12 = sshll.u32 %s262_s17, 4  ;;  %s1210_s18 = sshll.u32 %s2025_s25, 8 }
  0x56   : > { %s2224_s19 = scalar_select %p45_p12, %s2017_s23, %s47_s14  }
  0x57   : > { %s2491_s0 = sld [smem:[#allocation21_spill]]  ;;  %s266_s13 = scalar_lea.vmem [#allocation3], %s2220_s12 }
  0x58   : > { %2490 = sst [smem:[#allocation20_spill]] %s2224_s19  ;;  %s275_s28 = sshll.u32 %s266_s13, 4  ;;  %s2238_s28 = int_to_ptr.vmem [resolvable:$true] %s275_s28 }
  0x59   : > { %p2234_p11 = pnand %p1758_p3, %p56_p5  ;;  %s2243_s20 = scalar_lea.hbm %s2460_s1, %s1210_s18 }
  0x5a   : > { %s2245_s9 = scalar_lea.sflag [#allocation4], %s262_s17 }
  0x5b   : > { %p1877_p1 = pneg %p2234_p11 }
  0x5d   : > { %s2229_s11 = scalar_lea.hbm %s2491_s0, %s1210_s18  ;;  %s1880_s10 = scalar_lea.hbm %s2491_s0, 512 }
  0x5e   : > { %s1875_s2 = scalar_lea.hbm %s2229_s11, 256  ;;  %p1881_p6 = scmp.lt.u32.totalorder %s2229_s11, %s2491_s0 }
  0x5f   : > { %p1876_p0 = scmp.ne.s32.totalorder %s2229_s11, %s1875_s2  ;;  %p1882_p10 = scmp.lt.u32.totalorder %s1880_s10, %s1875_s2 }
  0x60   : > { %p1884_p5 = scmp.lt.u32.totalorder %s1875_s2, %s2229_s11 }
  0x61   : > { %p1878_p2 = pnand %p1877_p1, %p1876_p0  ;;  %p1883_p3 = por %p1882_p10, %p1881_p6 }
  0x63   : > { %p1879_p13 = pneg %p1878_p2  ;;  %p1885_p7 = por %p1884_p5, %p1883_p3 }
  0x65   : > { %p1886_p12 = pnand %p1885_p7, %p1879_p13 }
  0x67   : > { %1889 = shalt.err (!%p1886_p12)
}
  0x68   : > { %s1890_s8 = scalar_lea.vmem %s2238_s28, 256  ;;  %s2035_s4 = smov [#allocation3]  }
  0x69   : > { %p1891_p0 = scmp.ne.s32.totalorder %s2238_s28, %s1890_s8  ;;  %s1895_s17 = sshll.u32 %s2035_s4, 4  ;;  %s1896_s17 = int_to_ptr.vmem [resolvable:$false] %s1895_s17 }
  0x6a   : > { %s1897_s25 = scalar_lea.vmem %s1896_s17, 512  ;;  %p1898_p4 = scmp.lt.s32.totalorder %s2238_s28, %s1896_s17 }
  0x6b   : > { %p1893_p2 = pnand %p1891_p0, %p1877_p1  ;;  %p1899_p6 = scmp.lt.s32.totalorder %s1897_s25, %s1890_s8 }
  0x6d   : > { %p1894_p9 = pneg %p1893_p2  ;;  %p1900_p10 = por %p1899_p6, %p1898_p4 }
  0x6f   : > { %p1901_p3 = pnand %p1900_p10, %p1894_p9 }
  0x71   : > { %1904 = shalt.err (!%p1901_p3)
}
  0x72   : > { %s2493_s2 = smov 8   ;;  %s2494_s10 = smov 128  }
  0x73   : > { %1748 = dma.hbm_to_vmem [thread:$0]  (!%p2234_p11), %s2229_s11, 256, %s2238_s28, %s2245_s9, %s2494_s10, %s2494_s10, %s2493_s2  }
  0x74   : > { %s289_s18 = scalar_lea.vmem [#allocation6], %s2220_s12  ;;  %s285_s14 = sand.u32 1, %s2029_s26  }
  0x75   : > { %s301_s19 = sshll.u32 %s289_s18, 4  ;;  %s2280_s13 = scalar_lea.sflag [#allocation7], %s285_s14  ;;  %s2278_s19 = int_to_ptr.vmem [resolvable:$true] %s301_s19 }
  0x76   : > { %s1905_s8 = scalar_lea.hbm %s2243_s20, 256  ;;  %s1910_s25 = scalar_lea.hbm %s2460_s1, 512 }
  0x77   : > { %p1906_p4 = scmp.ne.s32.totalorder %s2243_s20, %s1905_s8  ;;  %p1911_p5 = scmp.lt.u32.totalorder %s2243_s20, %s2460_s1 }
  0x78   : > { %p1912_p7 = scmp.lt.u32.totalorder %s1910_s25, %s1905_s8  ;;  %p1914_p0 = scmp.lt.u32.totalorder %s1905_s8, %s2243_s20 }
  0x79   : > { %p1908_p9 = pnand %p1906_p4, %p1877_p1 }
  0x7a   : > { %p1913_p12 = por %p1912_p7, %p1911_p5 }
  0x7b   : > { %p1909_p13 = pneg %p1908_p9 }
  0x7c   : > { %p1915_p2 = por %p1914_p0, %p1913_p12 }
  0x7e   : > { %p1916_p6 = pnand %p1915_p2, %p1909_p13 }
  0x80   : > { %1919 = shalt.err (!%p1916_p6)
}
  0x81   : > { %s1920_s28 = scalar_lea.vmem %s2278_s19, 256  ;;  %s2036_s12 = smov [#allocation6]  }
  0x82   : > { %p1921_p10 = scmp.ne.s32.totalorder %s2278_s19, %s1920_s28  ;;  %s1925_s11 = sshll.u32 %s2036_s12, 4  ;;  %s1926_s11 = int_to_ptr.vmem [resolvable:$false] %s1925_s11 }
  0x83   : > { %s1927_s0 = scalar_lea.vmem %s1926_s11, 512  ;;  %p1928_p9 = scmp.lt.s32.totalorder %s2278_s19, %s1926_s11 }
  0x84   : > { %p1923_p3 = pnand %p1921_p10, %p1877_p1  ;;  %p1929_p5 = scmp.lt.s32.totalorder %s1927_s0, %s1920_s28 }
  0x86   : > { %p1924_p4 = pneg %p1923_p3  ;;  %p1930_p7 = por %p1929_p5, %p1928_p9 }
  0x88   : > { %p1931_p12 = pnand %p1930_p7, %p1924_p4 }
  0x8a   : > { %1934 = shalt.err (!%p1931_p12)
}
  0x8b   : > { %1751 = dma.hbm_to_vmem [thread:$0]  (!%p2234_p11), %s2243_s20, 256, %s2278_s19, %s2280_s13, %s2494_s10, %s2494_s10, %s2493_s2  }
  0x8c   : > { %313 = sbr.rel (%p2128_p8) target bundleno = 715 (0x2cb), region = 44  ;;  %s2312_s23 = sand.u32 (!%p2128_p8), 1, %s2013_s22  }
  0x8d   : > { %s1197_s9 = sshll.u32 (!%p2128_p8), %s2312_s23, 4  ;;  %s316_s18 = scalar_lea.sflag (!%p2128_p8), [#allocation4], %s2312_s23 }
  0x8e   : > { %s2318_s16 = scalar_lea.vmem (!%p2128_p8), [#allocation3], %s1197_s9  ;;  %p2495_p1 = scmp.ne.s32.totalorder (!%p2128_p8), %s2481_s29, 0 }
  0x93   : > { %1988 = dma.done.wait (%p2495_p1), %s316_s18, 256  }
  0x94   : > { %1990 = vsyncadd (%p2495_p1), %s316_s18, 4294967040  ;;  %s324_s7 = sand.u32 1, %s2109_s27  }
  0x95   : > { %s325_s20 = scalar_lea.sflag [#allocation7], %s324_s7 }
  0x96   : > { %1992 = dma.done.wait (%p2495_p1), %s325_s20, 256  }
  0x97   : > { %1994 = vsyncadd (%p2495_p1), %s325_s20, 4294967040  ;;  %p2496_p8 = scmp.eq.s32.totalorder %s2109_s27, 0 }
  0x99   : > { %1996 = dma.done.wait (%p2496_p8), [#allocation7], 6144   ;;  %p2497_p11 = pmov %p2496_p8 }
  0x9a   : > { %p2498_p13 = pmov %p2496_p8 }
  0x9b   : > { %1998 = vsyncadd (%p2497_p11), [#allocation7], 4294961152 }
  0x9c   : > { %2000 = dma.done.wait (%p2498_p13), [#allocation10], 6144   ;;  %p2499_p0 = pmov %p2496_p8 }
  0x9d   : > { %v2037_v0 = vmov 0.0|0.0   ;;  %v2038_v1 = vmov 0.0   ;;  %vm2039_vm0 = vmmov 0   ;;  %v410_v2 = vld [vmem:[#allocation8 + $0x80] sm:$0xff]  ;;  %v411_v3 = vld [vmem:[#allocation8 + $0x88] sm:$0xff]  ;;  %v412_v7 = vld [vmem:[#allocation8 + $0x90] sm:$0xff] }
  0x9e   : > { %2002 = vsyncadd (%p2499_p0), [#allocation10], 4294961152  ;;  %1552 = vmatprep.subr.bf16.mxu0 %v2037_v0  ;;  %1576 = vmatprep.subr.bf16.mxu1 %v2037_v0  ;;  %382 = vst [vmem:[#allocation2] sm:$0xff] %v2038_v1  ;;  %v390_v4 = vld [vmem:[#allocation8] sm:$0xff]  ;;  %v1553_v5 = vpack.c.bf16 %v411_v3, %v410_v2  ;;  %v391_v6 = vld [vmem:[#allocation8 + $0x8] sm:$0xff]  ;;  %vm757_vm2 = vcmask 1045504  }
  0x9f   : > { %1356 = vmatprep.mubr.msk.f32.mxu0 %vm2039_vm0, %v2038_v1  ;;  %1397 = vmatprep.mubr.msk.f32.mxu1 %vm2039_vm0, %v2038_v1  ;;  %v413_v8 = vld [vmem:[#allocation8 + $0x98] sm:$0xff]  ;;  %v1577_v9 = vpack.c.bf16 %v391_v6, %v390_v4  ;;  %v392_v10 = vld [vmem:[#allocation8 + $0x10] sm:$0xff]  ;;  %v414_v14 = vld [vmem:[#allocation8 + $0xa0] sm:$0xff]  ;;  %vm932_vm3 = vcmask 1043456   ;;  %s369_s19 = scalar_lea.vmem [#allocation11], %s1197_s9  ;;  %s1212_s13 = sshll.u32 %s2021_s24, 8 }
  0xa0   : > { %v393_v11 = vld [vmem:[#allocation8 + $0x18] sm:$0xff]  ;;  %1554 = vmatpush3.bf16.msra.mxu0 %v1553_v5  ;;  %v1556_v12 = vpack.c.bf16 %v413_v8, %v412_v7  ;;  %v415_v15 = vld [vmem:[#allocation8 + $0xa8] sm:$0xff]  ;;  %v394_v16 = vld [vmem:[#allocation8 + $0x20] sm:$0xff]  ;;  %s1052_s14 = sshll.u32 %s369_s19, 4  ;;  %s2410_s17 = scalar_lea.hbm %s2465_s6, %s1212_s13  ;;  %s2404_s14 = int_to_ptr.vmem [resolvable:$true] %s1052_s14 }
  0xa1   : > { %1578 = vmatpush3.bf16.msra.mxu1 %v1577_v9  ;;  %1555 = vmatprep.subr.bf16.mxu0 %v2037_v0  ;;  %v1580_v13 = vpack.c.bf16 %v393_v11, %v392_v10  ;;  %v395_v17 = vld [vmem:[#allocation8 + $0x28] sm:$0xff]  ;;  %v1559_v18 = vpack.c.bf16 %v415_v15, %v414_v14  ;;  %v416_v20 = vld [vmem:[#allocation8 + $0xb0] sm:$0xff]  ;;  %v417_v21 = vld [vmem:[#allocation8 + $0xb8] sm:$0xff]  ;;  %s1037_s25 = scalar_lea.sflag [#allocation5], %s2312_s23  ;;  %s1935_s24 = scalar_lea.vmem %s2404_s14, 256 }
  0xa2   : > { %1579 = vmatprep.subr.bf16.mxu1 %v2037_v0  ;;  %v1583_v19 = vpack.c.bf16 %v395_v17, %v394_v16  ;;  %v396_v22 = vld [vmem:[#allocation8 + $0x30] sm:$0xff]  ;;  %v397_v23 = vld [vmem:[#allocation8 + $0x38] sm:$0xff]  ;;  %v1562_v25 = vpack.c.bf16 %v417_v21, %v416_v20  ;;  %v418_v27 = vld [vmem:[#allocation8 + $0xc0] sm:$0xff]  ;;  %p1936_p2 = scmp.ne.s32.totalorder %s2404_s14, %s1935_s24  ;;  %p2500_p6 = scmp.ne.s32.totalorder %s2489_s15, 0 }
  0xa3   : > { %v2349_v24 = vld [vmem:[%s2318_s16] sm:$0xff]  ;;  %v1586_v26 = vpack.c.bf16 %v397_v23, %v396_v22  ;;  %v419_v28 = vld [vmem:[#allocation8 + $0xc8] sm:$0xff]  ;;  %v421_v35 = vld [vmem:[#allocation8 + $0xd8] sm:$0xff]  ;;  %s2040_s28 = smov [#allocation11]  }
  0xa4   : > { %1557 = vmatpush3.bf16.msra.mxu0 %v1556_v12  ;;  %385 = vst [vmem:[#allocation2 + $0x8] sm:$0xff] %v2349_v24  ;;  %v398_v29 = vld [vmem:[#allocation8 + $0x40] sm:$0xff]  ;;  %v399_v30 = vld [vmem:[#allocation8 + $0x48] sm:$0xff]  ;;  %v1565_v31 = vpack.c.bf16 %v419_v28, %v418_v27  ;;  %v420_v34 = vld [vmem:[#allocation8 + $0xd0] sm:$0xff]  ;;  %p1937_p10 = pnand %p1936_p2, %p2500_p6  ;;  %s1939_s12 = sshll.u32 %s2040_s28, 4  ;;  %s1940_s12 = int_to_ptr.vmem [resolvable:$false] %s1939_s12 }
  0xa5   : > { %1581 = vmatpush3.bf16.msra.mxu1 %v1580_v13  ;;  %1558 = vmatprep.subr.bf16.mxu0 %v2037_v0  ;;  %v2355_v32 = vld [vmem:[%s2318_s16 + $0x8] sm:$0xff]  ;;  %v1589_v33 = vpack.c.bf16 %v399_v30, %v398_v29  ;;  %v400_v36 = vld [vmem:[#allocation8 + $0x50] sm:$0xff]  ;;  %v1568_v38 = vpack.c.bf16 %v421_v35, %v420_v34  ;;  %v422_v40 = vld [vmem:[#allocation8 + $0xe0] sm:$0xff]  ;;  %s1941_s11 = scalar_lea.vmem %s1940_s12, 512  ;;  %p1942_p4 = scmp.lt.s32.totalorder %s2404_s14, %s1940_s12 }
  0xa6   : > { %1582 = vmatprep.subr.bf16.mxu1 %v2037_v0  ;;  %386 = vst [vmem:[#allocation2 + $0x10] sm:$0xff] %v2355_v32  ;;  %v401_v37 = vld [vmem:[#allocation8 + $0x58] sm:$0xff]  ;;  %v423_v41 = vld [vmem:[#allocation8 + $0xe8] sm:$0xff]  ;;  %v402_v42 = vld [vmem:[#allocation8 + $0x60] sm:$0xff]  ;;  %p1938_p3 = pneg %p1937_p10  ;;  %p1943_p9 = scmp.lt.s32.totalorder %s1941_s11, %s1935_s24 }
  0xa7   : > { %v1592_v39 = vpack.c.bf16 %v401_v37, %v400_v36  ;;  %v403_v43 = vld [vmem:[#allocation8 + $0x68] sm:$0xff]  ;;  %v1571_v44 = vpack.c.bf16 %v423_v41, %v422_v40  ;;  %v424_v46 = vld [vmem:[#allocation8 + $0xf0] sm:$0xff]  ;;  %v425_v47 = vld [vmem:[#allocation8 + $0xf8] sm:$0xff] }
  0xa8   : > { %1560 = vmatpush3.bf16.msra.mxu0 %v1559_v18  ;;  %v1595_v45 = vpack.c.bf16 %v403_v43, %v402_v42  ;;  %v404_v48 = vld [vmem:[#allocation8 + $0x70] sm:$0xff]  ;;  %v405_v49 = vld [vmem:[#allocation8 + $0x78] sm:$0xff]  ;;  %v1574_v50 = vpack.c.bf16 %v425_v47, %v424_v46  ;;  %v590_v52 = vld [vmem:[#allocation8 + $0x100] sm:$0xff]  ;;  %p1944_p5 = por %p1943_p9, %p1942_p4 }
  0xa9   : > { %1584 = vmatpush3.bf16.msra.mxu1 %v1583_v19  ;;  %1561 = vmatprep.subr.bf16.mxu0 %v2037_v0  ;;  %v1598_v51 = vpack.c.bf16 %v405_v49, %v404_v48  ;;  %v591_v53 = vld [vmem:[#allocation8 + $0x108] sm:$0xff]  ;;  %v592_v56 = vld [vmem:[#allocation8 + $0x110] sm:$0xff]  ;;  %v593_v57 = vld [vmem:[#allocation8 + $0x118] sm:$0xff] }
  0xaa   : > { %1585 = vmatprep.subr.bf16.mxu1 %v2037_v0  ;;  %v1601_v55 = vpack.c.bf16 %v591_v53, %v590_v52  ;;  %v1604_v58 = vpack.c.bf16 %v593_v57, %v592_v56  ;;  %v594_v60 = vld [vmem:[#allocation8 + $0x120] sm:$0xff]  ;;  %v595_v61 = vld [vmem:[#allocation8 + $0x128] sm:$0xff]  ;;  %v596_v2 = vld [vmem:[#allocation8 + $0x130] sm:$0xff]  ;;  %p1945_p7 = pnand %p1944_p5, %p1938_p3 }
  0xab   : > { %v406_v54 = vld [vmem:[#allocation2 + $0x2] sm:$0xff]  ;;  %v1607_v62 = vpack.c.bf16 %v595_v61, %v594_v60  ;;  %v597_v3 = vld [vmem:[#allocation8 + $0x138] sm:$0xff]  ;;  %v598_v6 = vld [vmem:[#allocation8 + $0x140] sm:$0xff] }
  0xac   : > { %1563 = vmatpush3.bf16.msra.mxu0 %v1562_v25  ;;  %v1610_v5 = vpack.c.bf16 %v597_v3, %v596_v2  ;;  %v599_v7 = vld [vmem:[#allocation8 + $0x148] sm:$0xff]  ;;  %v600_v9 = vld [vmem:[#allocation8 + $0x150] sm:$0xff]  ;;  %v601_v10 = vld [vmem:[#allocation8 + $0x158] sm:$0xff] }
  0xad   : > { %1587 = vmatpush3.bf16.msra.mxu1 %v1586_v26  ;;  %1564 = vmatprep.subr.bf16.mxu0 %v2037_v0  ;;  %v407_v59 = vld [vmem:[#allocation2 + $0xa] sm:$0xff]  ;;  %v408_v63 = vld [vmem:[#allocation2 + $0x12] sm:$0xf]  ;;  %v1613_v8 = vpack.c.bf16 %v599_v7, %v598_v6  ;;  %v1616_v11 = vpack.c.bf16 %v601_v10, %v600_v9  ;;  %v602_v12 = vld [vmem:[#allocation8 + $0x160] sm:$0xff] }
  0xae   : > { %1588 = vmatprep.subr.bf16.mxu1 %v2037_v0  ;;  %v389_v4 = vld [vmem:[#allocation2 + $0x10] sm:$0xf]  ;;  %v603_v13 = vld [vmem:[#allocation8 + $0x168] sm:$0xff]  ;;  %v604_v15 = vld [vmem:[#allocation8 + $0x170] sm:$0xff] }
  0xaf   : > { %v1619_v14 = vpack.c.bf16 %v603_v13, %v602_v12  ;;  %v605_v16 = vld [vmem:[#allocation8 + $0x178] sm:$0xff]  ;;  %v586_v18 = vld [vmem:[#allocation2 + $0x4] sm:$0xff]  ;;  %v721_v21 = vld [vmem:[#allocation9] sm:$0xff] }
  0xb0   : > { %1566 = vmatpush3.bf16.msra.mxu0 %v1565_v31  ;;  %v1622_v17 = vpack.c.bf16 %v605_v16, %v604_v15  ;;  %v587_v19 = vld [vmem:[#allocation2 + $0xc] sm:$0xff]  ;;  %v588_v20 = vld [vmem:[#allocation2 + $0x14] sm:$0xf]  ;;  %v722_v22 = vld [vmem:[#allocation9 + $0x8] sm:$0xff] }
  0xb1   : > { %1590 = vmatpush3.bf16.msra.mxu1 %v1589_v33  ;;  %1567 = vmatprep.subr.bf16.mxu0 %v2037_v0  ;;  %v723_v23 = vld [vmem:[#allocation9 + $0x10] sm:$0xff]  ;;  %v1656_v25 = vpack.c.bf16 %v722_v22, %v721_v21  ;;  %v724_v26 = vld [vmem:[#allocation9 + $0x18] sm:$0xff]  ;;  %v738_v27 = vld [vmem:[#allocation9 + $0x80] sm:$0xff] }
  0xb2   : > { %1591 = vmatprep.subr.bf16.mxu1 %v2037_v0  ;;  %v1660_v28 = vpack.c.bf16 %v724_v26, %v723_v23  ;;  %v725_v30 = vld [vmem:[#allocation9 + $0x20] sm:$0xff]  ;;  %v726_v31 = vld [vmem:[#allocation9 + $0x28] sm:$0xff]  ;;  %v740_v33 = vld [vmem:[#allocation9 + $0x90] sm:$0xff]  ;;  %v702_v26 = vlaneseq }
  0xb3   : > { %v741_v34 = vld [vmem:[#allocation9 + $0x98] sm:$0xff]  ;;  %v743_v36 = vld [vmem:[#allocation9 + $0xa8] sm:$0xff]  ;;  %v1664_v37 = vpack.c.bf16 %v726_v31, %v725_v30  ;;  %v744_v41 = vld [vmem:[#allocation9 + $0xb0] sm:$0xff] }
  0xb4   : > { %1569 = vmatpush3.bf16.msra.mxu0 %v1568_v38  ;;  %v1628_v35 = vpack.c.bf16 %v741_v34, %v740_v33  ;;  %v727_v38 = vld [vmem:[#allocation9 + $0x30] sm:$0xff]  ;;  %v745_v42 = vld [vmem:[#allocation9 + $0xb8] sm:$0xff]  ;;  %v747_v52 = vld [vmem:[#allocation9 + $0xc8] sm:$0xff] }
  0xb5   : > { %1593 = vmatpush3.bf16.msra.mxu1 %v1592_v39  ;;  %1570 = vmatprep.subr.bf16.mxu0 %v2037_v0  ;;  %v728_v39 = vld [vmem:[#allocation9 + $0x38] sm:$0xff]  ;;  %v1636_v46 = vpack.c.bf16 %v745_v42, %v744_v41  ;;  %v731_v48 = vld [vmem:[#allocation9 + $0x50] sm:$0xff]  ;;  %v733_v53 = vld [vmem:[#allocation9 + $0x60] sm:$0xff] }
  0xb6   : > { %1594 = vmatprep.subr.bf16.mxu1 %v2037_v0  ;;  %v1668_v43 = vpack.c.bf16 %v728_v39, %v727_v38  ;;  %v732_v49 = vld [vmem:[#allocation9 + $0x58] sm:$0xff]  ;;  %v748_v57 = vld [vmem:[#allocation9 + $0xd0] sm:$0xff]  ;;  %v751_v2 = vld [vmem:[#allocation9 + $0xe8] sm:$0xff] }
  0xb7   : > { %v736_v61 = vld [vmem:[#allocation9 + $0x78] sm:$0xff]  ;;  %v916_v3 = vld [vmem:[#allocation9 + $0x100] sm:$0xff]  ;;  %v752_v7 = vld [vmem:[#allocation9 + $0xf0] sm:$0xff] }
  0xb8   : > { %1572 = vmatpush3.bf16.msra.mxu0 %v1571_v44  ;;  %v729_v44 = vld [vmem:[#allocation9 + $0x40] sm:$0xff] }
  0xb9   : > { %1596 = vmatpush3.bf16.msra.mxu1 %v1595_v45  ;;  %1573 = vmatprep.subr.bf16.mxu0 %v2037_v0  ;;  %v730_v45 = vld [vmem:[#allocation9 + $0x48] sm:$0xff] }
  0xba   : > { %1597 = vmatprep.subr.bf16.mxu1 %v2037_v0  ;;  %v1672_v47 = vpack.c.bf16 %v730_v45, %v729_v44 }
  0xbc   : > { %1575 = vmatpush3.bf16.msra.mxu0 %v1574_v50  ;;  %v1676_v50 = vpack.c.bf16 %v732_v49, %v731_v48 }
  0xbd   : > { %1599 = vmatpush3.bf16.msra.mxu1 %v1598_v51  ;;  %1600 = vmatprep.subr.bf16.mxu0 %v2037_v0  ;;  %v746_v51 = vld [vmem:[#allocation9 + $0xc0] sm:$0xff] }
  0xbe   : > { %1657 = vmatprep.subr.bf16.mxu1 %v1656_v25 }
  0xbf   : > { %1357 = vmatmul.mubr.f32.vlgmr.msra.gmra.mrb[0].mxu0 %v406_v54  ;;  %v1640_v54 = vpack.c.bf16 %v747_v52, %v746_v51 }
  0xc0   : > { %1398 = vmatmul.mubr.f32.vlgmr.msra.gmra.mrb[0].mxu1 %v2038_v1  ;;  %1602 = vmatpush3.bf16.msra.mxu0 %v1601_v55  ;;  %v734_v55 = vld [vmem:[#allocation9 + $0x68] sm:$0xff] }
  0xc1   : > { %1603 = vmatprep.subr.bf16.mxu0 %v2037_v0  ;;  %1359 = vmatprep.mubr.msk.f32.mxu0 %vm2039_vm0, %v2038_v1  ;;  %v1680_v56 = vpack.c.bf16 %v734_v55, %v733_v53 }
  0xc2   : > { %1400 = vmatprep.mubr.msk.f32.mxu1 %vm2039_vm0, %v2038_v1  ;;  %1659 = vmatpush3.bf16.msra.mxu1 %v1656_v25 }
  0xc3   : > { %1360 = vmatmul.mubr.f32.gmra.mrb[2].mxu0 %v407_v59  ;;  %1661 = vmatprep.subr.bf16.mxu1 %v1660_v28  ;;  %v735_v59 = vld [vmem:[#allocation9 + $0x70] sm:$0xff] }
  0xc4   : > { %1605 = vmatpush3.bf16.msra.mxu0 %v1604_v58  ;;  %1401 = vmatmul.mubr.f32.gmra.mrb[2].mxu1 %v2349_v24  ;;  %v749_v58 = vld [vmem:[#allocation9 + $0xd8] sm:$0xff] }
  0xc5   : > { %1606 = vmatprep.subr.bf16.mxu0 %v2037_v0  ;;  %1362 = vmatprep.mubr.msk.f32.mxu0 %vm2039_vm0, %v2038_v1  ;;  %v1644_v60 = vpack.c.bf16 %v749_v58, %v748_v57  ;;  %v923_v57 = vld [vmem:[#allocation9 + $0x138] sm:$0xff] }
  0xc6   : > { %1403 = vmatprep.mubr.msk.f32.mxu1 %vm2039_vm0, %v2038_v1  ;;  %1663 = vmatpush3.bf16.msra.mxu1 %v1660_v28  ;;  %v703_v28 = vshrl.u32 %v702_v26, 7 }
  0xc7   : > { %1363 = vmatmul.mubr.f32.gmra.mrb[4].mxu0 %v408_v63  ;;  %1665 = vmatprep.subr.bf16.mxu1 %v1664_v37  ;;  %v750_v63 = vld [vmem:[#allocation9 + $0xe0] sm:$0xff] }
  0xc8   : > { %1608 = vmatpush3.bf16.msra.mxu0 %v1607_v62  ;;  %1404 = vmatmul.mubr.f32.gmra.mrb[4].mxu1 %v389_v4  ;;  %v1684_v62 = vpack.c.bf16 %v736_v61, %v735_v59  ;;  %v1648_v4 = vpack.c.bf16 %v751_v2, %v750_v63  ;;  %vm706_vm1 = vcmp.ge.s32.totalorder %v703_v28, 4  ;;  %v924_v63 = vld [vmem:[#allocation9 + $0x140] sm:$0xff]  ;;  %v925_v2 = vld [vmem:[#allocation9 + $0x148] sm:$0xff] }
  0xc9   : > { %1609 = vmatprep.subr.bf16.mxu0 %v2037_v0  ;;  %1438 = vmatprep.mubr.msk.f32.mxu0 %vm2039_vm0, %v2038_v1 }
  0xca   : > { %1667 = vmatpush3.bf16.msra.mxu1 %v1664_v37  ;;  %v919_v37 = vld [vmem:[#allocation9 + $0x118] sm:$0xff] }
  0xcb   : > { %1669 = vmatprep.subr.bf16.mxu1 %v1668_v43 }
  0xcc   : > { %1611 = vmatpush3.bf16.msra.mxu0 %v1610_v5  ;;  %v917_v5 = vld [vmem:[#allocation9 + $0x108] sm:$0xff] }
  0xcd   : > { %1612 = vmatprep.subr.bf16.mxu0 %v2037_v0  ;;  %v1688_v6 = vpack.c.bf16 %v917_v5, %v916_v3  ;;  %v1704_v3 = vpack.c.bf16 %v925_v2, %v924_v63  ;;  %v927_v5 = vld [vmem:[#allocation9 + $0x158] sm:$0xff] }
  0xce   : > { %1671 = vmatpush3.bf16.msra.mxu1 %v1668_v43 }
  0xcf   : > { %1673 = vmatprep.subr.bf16.mxu1 %v1672_v47 }
  0xd0   : > { %1614 = vmatpush3.bf16.msra.mxu0 %v1613_v8  ;;  %v753_v8 = vld [vmem:[#allocation9 + $0xf8] sm:$0xff] }
  0xd1   : > { %1615 = vmatprep.subr.bf16.mxu0 %v2037_v0  ;;  %v1652_v9 = vpack.c.bf16 %v753_v8, %v752_v7  ;;  %v928_v7 = vld [vmem:[#allocation9 + $0x160] sm:$0xff]  ;;  %v929_v8 = vld [vmem:[#allocation9 + $0x168] sm:$0xff] }
  0xd2   : > { %1675 = vmatpush3.bf16.msra.mxu1 %v1672_v47  ;;  %v921_v47 = vld [vmem:[#allocation9 + $0x128] sm:$0xff] }
  0xd3   : > { %1677 = vmatprep.subr.bf16.mxu1 %v1676_v50 }
  0xd4   : > { %1617 = vmatpush3.bf16.msra.mxu0 %v1616_v11 }
  0xd5   : > { %1618 = vmatprep.subr.bf16.mxu0 %v2037_v0 }
  0xd6   : > { %1679 = vmatpush3.bf16.msra.mxu1 %v1676_v50 }
  0xd7   : > { %1681 = vmatprep.subr.bf16.mxu1 %v1680_v56 }
  0xd8   : > { %1620 = vmatpush3.bf16.msra.mxu0 %v1619_v14 }
  0xd9   : > { %1621 = vmatprep.subr.bf16.mxu0 %v2037_v0  ;;  %v739_v0 = vld [vmem:[#allocation9 + $0x88] sm:$0xff] }
  0xda   : > { %v1624_v29 = vpack.c.bf16 %v739_v0, %v738_v27  ;;  %1683 = vmatpush3.bf16.msra.mxu1 %v1680_v56  ;;  %v1202_v0 = vld [vmem:[%s2462_s3] ss:$0 sm:$0xff]  ;;  %v922_v56 = vld [vmem:[#allocation9 + $0x130] sm:$0xff] }
  0xdb   : > { %1685 = vmatprep.subr.bf16.mxu1 %v1684_v62  ;;  %v1700_v61 = vpack.c.bf16 %v923_v57, %v922_v56 }
  0xdc   : > { %1623 = vmatpush3.bf16.msra.mxu0 %v1622_v17 }
  0xdd   : > { %1625 = vmatprep.subr.bf16.mxu0 %v1624_v29 }
  0xde   : > { %1687 = vmatpush3.bf16.msra.mxu1 %v1684_v62 }
  0xdf   : > { %1439 = vmatmul.mubr.f32.vlgmr.msra.gmra.mrb[6].mxu0 %v586_v18  ;;  %1689 = vmatprep.subr.bf16.mxu1 %v1688_v6 }
  0xe0   : > { %1441 = vmatprep.mubr.msk.f32.mxu0 %vm2039_vm0, %v2038_v1  ;;  %1627 = vmatpush3.bf16.msra.mxu0 %v1624_v29 }
  0xe1   : > { %1629 = vmatprep.subr.bf16.mxu0 %v1628_v35 }
  0xe3   : > { %1442 = vmatmul.mubr.f32.gmra.mrb[8].mxu0 %v587_v19 }
  0xe4   : > { %1444 = vmatprep.mubr.msk.f32.mxu0 %vm2039_vm0, %v2038_v1  ;;  %v742_v1 = vld [vmem:[#allocation9 + $0xa0] sm:$0xff]  ;;  %1631 = vmatpush3.bf16.msra.mxu0 %v1628_v35 }
  0xe5   : > { %v1632_v40 = vpack.c.bf16 %v743_v36, %v742_v1  ;;  %v918_v36 = vld [vmem:[#allocation9 + $0x110] sm:$0xff] }
  0xe6   : > { %v1692_v43 = vpack.c.bf16 %v919_v37, %v918_v36 }
  0xe7   : > { %1445 = vmatmul.mubr.f32.gmra.mrb[10].mxu0 %v588_v20  ;;  %1633 = vmatprep.subr.bf16.mxu0 %v1632_v40 }
  0xe8   : > { %1635 = vmatpush3.bf16.msra.mxu0 %v1632_v40 }
  0xe9   : > { %1637 = vmatprep.subr.bf16.mxu0 %v1636_v46 }
  0xec   : > { %1639 = vmatpush3.bf16.msra.mxu0 %v1636_v46  ;;  %v920_v46 = vld [vmem:[#allocation9 + $0x120] sm:$0xff] }
  0xed   : > { %1641 = vmatprep.subr.bf16.mxu0 %v1640_v54  ;;  %v1696_v55 = vpack.c.bf16 %v921_v47, %v920_v46 }
  0xf0   : > { %1643 = vmatpush3.bf16.msra.mxu0 %v1640_v54 }
  0xf1   : > { %1645 = vmatprep.subr.bf16.mxu0 %v1644_v60 }
  0xf4   : > { %1647 = vmatpush3.bf16.msra.mxu0 %v1644_v60 }
  0xf5   : > { %1649 = vmatprep.subr.bf16.mxu0 %v1648_v4 }
  0xf8   : > { %1651 = vmatpush3.bf16.msra.mxu0 %v1648_v4  ;;  %v926_v4 = vld [vmem:[#allocation9 + $0x150] sm:$0xff] }
  0xf9   : > { %1653 = vmatprep.subr.bf16.mxu0 %v1652_v9 }
  0xfc   : > { %1655 = vmatpush3.bf16.msra.mxu0 %v1652_v9  ;;  %v1712_v9 = vpack.c.bf16 %v929_v8, %v928_v7 }
 0x192   : > { %v492_v10 = vpop.f32.mrb[0].mxu0 }
 0x193   : > { %v1358_v11 = vpop.f32.mrb[1].mxu0  ;;  %v572_v12 = vpop.f32.mrb[0].mxu1 }
 0x194   : > { %v573_v13 = vadd.f32 %v572_v12, %v492_v10  ;;  %v1399_v14 = vpop.f32.mrb[1].mxu1  ;;  %v930_v10 = vld [vmem:[#allocation9 + $0x170] sm:$0xff]  ;;  %v931_v11 = vld [vmem:[#allocation9 + $0x178] sm:$0xff] }
 0x195   : > { %v1716_v12 = vpack.c.bf16 %v931_v11, %v930_v10 }
 0x196   : > { %v497_v15 = vpop.f32.mrb[2].mxu0 }
 0x197   : > { %v1361_v16 = vpop.f32.mrb[3].mxu0  ;;  %v577_v17 = vpop.f32.mrb[2].mxu1 }
 0x198   : > { %v578_v18 = vadd.f32 %v577_v17, %v497_v15  ;;  %v1402_v19 = vpop.f32.mrb[3].mxu1  ;;  %v1204_v16 = vld [vmem:[%s2464_s5] ss:$0 sm:$0xff] }
 0x19a   : > { %v502_v20 = vpop.f32.mrb[4].mxu0 }
 0x19b   : > { %v1364_v21 = vpop.f32.mrb[5].mxu0  ;;  %v582_v22 = vpop.f32.mrb[4].mxu1 }
 0x19c   : > { %v583_v23 = vadd.f32 %v582_v22, %v502_v20  ;;  %v1405_v25 = vpop.f32.mrb[5].mxu1 }
 0x1b2   : > { %v672_v27 = vpop.f32.mrb[6].mxu0 }
 0x1b3   : > { %v686_v29 = vadd.f32 %v672_v27, %v573_v13  ;;  %v1440_v30 = vpop.f32.mrb[7].mxu0 }
 0x1b5   : > { %v696_v31 = vadd.f32 %v1202_v0, %v686_v29 }
 0x1b6   : > { %v677_v33 = vpop.f32.mrb[8].mxu0 }
 0x1b7   : > { %v699_v34 = vmax.f32 %v696_v31, 0.0  ;;  %v687_v35 = vadd.f32 %v677_v33, %v578_v18  ;;  %v1443_v1 = vpop.f32.mrb[9].mxu0 }
 0x1b9   : > { %v697_v38 = vadd.f32 %v1202_v0, %v687_v35  ;;  %v718_v39 = vsel %vm706_vm1, %v699_v34, 0.0  ;;  %1514 = vmatprep.mubr.msk.f32.mxu1 %vm706_vm1, %v699_v34 }
 0x1ba   : > { %v682_v40 = vpop.f32.mrb[10].mxu0  ;;  %v758_v45 = vrot.slane %v718_v39, 2  ;;  %v933_v48 = vrot.slane %v718_v39, 4 }
 0x1bb   : > { %v700_v41 = vmax.f32 %v697_v38, 0.0  ;;  %v688_v42 = vadd.f32 %v682_v40, %v583_v23  ;;  %v1446_v44 = vpop.f32.mrb[11].mxu0 }
 0x1bd   : > { %v698_v49 = vadd.f32 %v1202_v0, %v688_v42  ;;  %1515 = vmatmul.mubr.f32.vlgmr.msra.gmra.mrb[6].mxu1 %v700_v41  ;;  %v759_v50 = vrot.slane %v700_v41, 2  ;;  %v934_v51 = vrot.slane %v700_v41, 4 }
 0x1be   : > { %1691 = vmatpush3.bf16.msra.mxu1 %v1688_v6  ;;  %v1708_v6 = vpack.c.bf16 %v927_v5, %v926_v4 }
 0x1bf   : > { %v701_v52 = vmax.f32 %v698_v49, 0.0  ;;  %v760_v53 = vsel %vm757_vm2, %v758_v45, %v759_v50  ;;  %1693 = vmatprep.subr.bf16.mxu1 %v1692_v43  ;;  %v935_v54 = vsel %vm932_vm3, %v933_v48, %v934_v51 }
 0x1c0   : > { %1479 = vmatprep.mubr.f32.mxu0 %v760_v53  ;;  %1549 = vmatprep.mubr.f32.mxu1 %v935_v54 }
 0x1c1   : > { %v761_v58 = vrot.slane %v701_v52, 2  ;;  %v936_v59 = vrot.slane %v701_v52, 4 }
 0x1c2   : > { %1695 = vmatpush3.bf16.msra.mxu1 %v1692_v43 }
 0x1c3   : > { %v762_v60 = vsel %vm757_vm2, %v759_v50, %v761_v58  ;;  %1697 = vmatprep.subr.bf16.mxu1 %v1696_v55  ;;  %v937_v62 = vsel %vm932_vm3, %v934_v51, %v936_v59 }
 0x1c4   : > { %1480 = vmatmul.mubr.f32.vlgmr.msra.gmra.mrb[12].mxu0 %v762_v60 }
 0x1c6   : > { %1699 = vmatpush3.bf16.msra.mxu1 %v1696_v55 }
 0x1c7   : > { %1701 = vmatprep.subr.bf16.mxu1 %v1700_v61 }
 0x1ca   : > { %1703 = vmatpush3.bf16.msra.mxu1 %v1700_v61 }
 0x1cb   : > { %1705 = vmatprep.subr.bf16.mxu1 %v1704_v3 }
 0x1ce   : > { %1707 = vmatpush3.bf16.msra.mxu1 %v1704_v3 }
 0x1cf   : > { %1709 = vmatprep.subr.bf16.mxu1 %v1708_v6 }
 0x1d2   : > { %1711 = vmatpush3.bf16.msra.mxu1 %v1708_v6 }
 0x1d3   : > { %1713 = vmatprep.subr.bf16.mxu1 %v1712_v9 }
 0x1d6   : > { %1715 = vmatpush3.bf16.msra.mxu1 %v1712_v9 }
 0x1d7   : > { %1717 = vmatprep.subr.bf16.mxu1 %v1716_v12 }
 0x1da   : > { %1719 = vmatpush3.bf16.msra.mxu1 %v1716_v12 }
 0x1dd   : > { %1550 = vmatmul.mubr.f32.vlgmr.msra.gmra.mrb[6].mxu1 %v937_v62 }
 0x297   : > { %v1481_v13 = vpop.f32.mrb[12].mxu0 }
 0x298   : > { %v831_v14 = vpop.f32.mrb[13].mxu0 }
 0x2b0   : > { %v1551_v15 = vpop.f32.mrb[6].mxu1 }
 0x2b1   : > { %v1720_v17 = vadd.f32 %v1551_v15, %v1481_v13  ;;  %v1006_v18 = vpop.f32.mrb[7].mxu1 }
 0x2b2   : > { %v1721_v19 = vadd.f32 %v1006_v18, %v831_v14 }
 0x2b3   : > { %v1025_v20 = vadd.f32 %v1720_v17, %v1204_v16 }
 0x2b4   : > { %v1024_v21 = vadd.f32 %v1721_v19, %v1204_v16 }
 0x2b5   : > { %v1027_v22 = vmax.f32 %v1025_v20, 0.0 }
 0x2b6   : > { %v1026_v23 = vmax.f32 %v1024_v21, 0.0 }
 0x2b7   : > { %v1031_v25 = vadd.f32 %v1027_v22, %v2355_v32 }
 0x2b8   : > { %v1030_v26 = vadd.f32 %v1026_v23, %v2349_v24 }
 0x2b9   : > { %v1033_v27 = vmax.f32 %v1031_v25, 0.0 }
 0x2ba   : > { %v1032_v0 = vmax.f32 %v1030_v26, 0.0 }
 0x2bb   : > { %1035 = vst [vmem:[%s369_s19 + $0x8] sm:$0xff] %v1033_v27 }
 0x2bc   : > { %1034 = vst [vmem:[%s369_s19] sm:$0xff] %v1032_v0 }
 0x2bd   : > { %1948 = shalt.err (!%p1945_p7)
}
 0x2be   : > { %s1949_s0 = scalar_lea.hbm %s2410_s17, 256  ;;  %s1953_s16 = scalar_lea.hbm %s2465_s6, 512 }
 0x2bf   : > { %p1950_p12 = scmp.ne.s32.totalorder %s2410_s17, %s1949_s0  ;;  %p1954_p11 = scmp.lt.u32.totalorder %s2410_s17, %s2465_s6 }
 0x2c0   : > { %p1955_p13 = scmp.lt.u32.totalorder %s1953_s16, %s1949_s0  ;;  %p1957_p2 = scmp.lt.u32.totalorder %s1949_s0, %s2410_s17 }
 0x2c1   : > { %p1951_p1 = pnand %p1950_p12, %p2500_p6 }
 0x2c2   : > { %p1956_p0 = por %p1955_p13, %p1954_p11 }
 0x2c3   : > { %p1952_p8 = pneg %p1951_p1 }
 0x2c4   : > { %p1958_p10 = por %p1957_p2, %p1956_p0 }
 0x2c6   : > { %p1959_p3 = pnand %p1958_p10, %p1952_p8 }
 0x2c8   : > { %1962 = shalt.err (!%p1959_p3)
}
 0x2c9   : > { %s2041_s27 = smov 128   ;;  %s2042_s29 = smov 8  }
 0x2ca   : > { %1736 = dma.vmem_to_hbm [thread:$0]  (%p2500_p6), %s2404_s14, 256, %s2410_s17, %s1037_s25, %s2041_s27, %s2041_s27, %s2042_s29  }
 0x2cb PF: > { %s1067_s2 = sand.u32 1, %s2009_s21   ;;  %p2501_p4 = scmp.ne.s32.totalorder %s2482_s30, 0 }
 0x2cc   : > { %p2502_p9 = scmp.ge.s32.totalorder %s2029_s26, 2  ;;  %s1068_s10 = scalar_lea.sflag [#allocation5], %s1067_s2 }
 0x2ce   : > { %p1753_p5 = pnand %p2502_p9, %p2501_p4 }
 0x2d0   : > { %2004 = dma.done.wait (!%p1753_p5), %s1068_s10, 256  }
 0x2d1   : > { %2006 = vsyncadd (!%p1753_p5), %s1068_s10, 4294967040  ;;  %s26_s26 = sadd.s32 1, %s2029_s26   ;;  %s2503_s19 = sld [smem:[#allocation17_spill]] }
 0x2d2   : > { %p23_p7 = scmp.ge.s32.totalorder %s26_s26, 4   ;;  %s2504_s23 = sld [smem:[#allocation20_spill]] }
 0x2d3   : > { %s2505_s24 = sld [smem:[#allocation18_spill]]  ;;  %s2506_s25 = sld [smem:[#allocation19_spill]] }
 0x2d4   : > { %s2507_s21 = smov %s2013_s22  ;;  %25 = sbr.rel (!%p23_p7) target bundleno = 13 (0xd), region = 114 }
 0x2d7   : > { %s2508_s22 = smov %s2503_s19 }
 0x2db   :  { %1073 = vsyncpa [#allocation4], 1 }
 0x2dc   :  { %1075 = vsyncpa [#allocation4 + $0x1], 1 }
 0x2dd   :  { %1076 = vsyncpa [#allocation7], 1 }
 0x2de   :  { %1078 = vsyncpa [#allocation7 + $0x1], 1 }
 0x2df   :  { %1079 = vsyncpa [#allocation10], 1 }
 0x2e0   :  { %1080 = vsyncpa [#allocation5], 1 }
 0x2e1   :  { %1082 = vsyncpa [#allocation5 + $0x1], 1 }

</bundles_post_ra>
